<compile_context>
chip_gen: v5e
topology: v5e:2x2
jax: 0.10.0
libtpu: 0.0.40
codegen_flags: <defaults>
</compile_context>

<pallas_src>
import functools

import jax
import jax.numpy as jnp
from jax.experimental import pallas as pl
from jax.experimental.pallas import tpu as pltpu

EPS = 1e-5  # matches nn.BatchNorm2d default


def pixel_shuffle(x, r):
    # (N, C*r^2, H, W) -> (N, C, H*r, W*r), matching torch.nn.PixelShuffle
    n, c_in, h, w = x.shape
    c = c_in // (r * r)
    x = x.reshape(n, c, r, r, h, w)
    x = x.transpose(0, 1, 4, 2, 5, 3)
    return x.reshape(n, c, h * r, w * r)


def _sum11(a):
    # full reduce of a 2-D tile to (1, 1): lane reduce, then sublane reduce
    return jnp.sum(jnp.sum(a, axis=1, keepdims=True), axis=0, keepdims=True)


def _stats_kernel(x_ref, gamma_ref, beta_ref, scale_ref, bias_ref,
                  k_ref, s_ref, q_ref, *, inv_tile, inv_count):
    # grid = (C, N, row_tiles); (N, row_tiles) is the per-channel reduction.
    # x_ref is a lane-dense (TR, L) tile of the RAW input for channel group c.
    c = pl.program_id(0)
    n = pl.program_id(1)
    t = pl.program_id(2)
    first = jnp.logical_and(n == 0, t == 0)
    last = jnp.logical_and(n == pl.num_programs(1) - 1,
                           t == pl.num_programs(2) - 1)

    x = x_ref[...].astype(jnp.float32)          # (TR, L)

    @pl.when(first)
    def _():
        # Shift K = mean of this channel's first tile -> shifted one-pass
        # variance (avoids catastrophic cancellation of E[x^2] - E[x]^2).
        k_ref[...] = _sum11(x) * inv_tile
        s_ref[...] = jnp.zeros_like(s_ref)
        q_ref[...] = jnp.zeros_like(q_ref)

    d = x - k_ref[...]                          # broadcast (1,1) over tile
    s_ref[...] += d                             # element-wise VPU adds only
    q_ref[...] += d * d

    @pl.when(last)
    def _():
        s_tot = _sum11(s_ref[...])              # one XLU collapse per channel
        q_tot = _sum11(q_ref[...])
        dmean = s_tot * inv_count               # mean - K
        mean = k_ref[...] + dmean
        var = jnp.maximum(q_tot * inv_count - dmean * dmean, 0.0)
        inv_std = jax.lax.rsqrt(var + EPS)
        scale = gamma_ref[c] * inv_std          # (1, 1)
        bias = beta_ref[c] - mean * scale       # (1, 1)
        scale_ref[pl.ds(c, 1), :] = scale
        bias_ref[pl.ds(c, 1), :] = bias


def _shuffle_norm_relu_kernel(x_ref, p_ref, scale_ref, bias_ref, o_ref):
    # x_ref: (r^2, TH, W) raw-input block for output channel c, rows [t*TH, ...)
    # p_ref: (r^2, W, r^2*W) 0/1 permutation matrices (resident; constant index)
    # o_ref: (TH, r^2*W) block of the output viewed as (N, C, H, r*Wo)
    c = pl.program_id(0)
    s = scale_ref[c]                            # per-channel scalars from SMEM
    b = bias_ref[c]
    r2 = x_ref.shape[0]

    acc = jnp.zeros(o_ref.shape, jnp.float32)
    for g in range(r2):                         # static, unrolled
        xg = x_ref[g].astype(jnp.float32)       # (TH, W)
        # hi is exactly bf16-representable, lo is the small remainder, so the
        # 0/1 matmul below is accurate no matter how the MXU handles f32.
        hi = xg.astype(jnp.bfloat16).astype(jnp.float32)
        lo = xg - hi
        pg = p_ref[g]                           # (W, r^2*W)
        acc += jnp.dot(hi, pg, preferred_element_type=jnp.float32)
        acc += jnp.dot(lo, pg, preferred_element_type=jnp.float32)

    o_ref[...] = jnp.maximum(acc * s + b, 0.0).astype(o_ref.dtype)


def _pick_row_tile(rows, lane, itemsize, max_tile_bytes):
    # largest divisor of `rows` that is a multiple of 8 (or rows itself) and
    # fits the byte budget; divisor-only tiling => no masked edge blocks.
    divs = [d for d in range(1, rows + 1) if rows % d == 0]
    cands = [d for d in divs if d % 8 == 0 or d == rows]
    fitting = [d for d in cands if d * lane * itemsize <= max_tile_bytes]
    return max(fitting) if fitting else min(cands)


def pixshuf_bn_relu(x, gamma, beta, ratio=2,
                    max_tile_bytes=2 * 1024 * 1024,
                    vmem_limit_bytes=32 * 1024 * 1024):
    n, c_in, h, w = x.shape
    r = ratio
    r2 = r * r
    assert c_in % r2 == 0, "input channels must be divisible by ratio^2"
    c = c_in // r2
    ho, wo = h * r, w * r
    itemsize = x.dtype.itemsize
    smem_spec = pl.BlockSpec(memory_space=pltpu.MemorySpace.SMEM)

    # ---------- pass 1: per-output-channel batch stats on the RAW input ------
    k_per_c = r2 * h * w                        # elements per (n, out-channel)
    if k_per_c % 128 == 0:                      # lane-dense view when possible
        rows1, lane1 = k_per_c // 128, 128
    else:
        rows1, lane1 = r2 * h, w
    x_stats = x.reshape(n, c, rows1, lane1)     # free (row-major) reshape
    tr = _pick_row_tile(rows1, lane1, itemsize, max_tile_bytes)
    grid1 = (c, n, rows1 // tr)

    stats_kernel = functools.partial(
        _stats_kernel,
        inv_tile=1.0 / float(tr * lane1),
        inv_count=1.0 / float(n * k_per_c))

    scale2d, bias2d = pl.pallas_call(
        stats_kernel,
        out_shape=(jax.ShapeDtypeStruct((c, 1), jnp.float32),
                   jax.ShapeDtypeStruct((c, 1), jnp.float32)),
        grid_spec=pltpu.PrefetchScalarGridSpec(
            num_scalar_prefetch=0,
            grid=grid1,
            in_specs=[pl.BlockSpec((None, None, tr, lane1),
                                   lambda ci, ni, ti: (ni, ci, ti, 0)),
                      smem_spec, smem_spec],
            out_specs=(pl.BlockSpec((c, 1), lambda ci, ni, ti: (0, 0)),
                       pl.BlockSpec((c, 1), lambda ci, ni, ti: (0, 0))),
            scratch_shapes=[pltpu.VMEM((1, 1), jnp.float32),
                            pltpu.VMEM((tr, lane1), jnp.float32),
                            pltpu.VMEM((tr, lane1), jnp.float32)]),
        compiler_params=pltpu.CompilerParams(
            # C axis must stay sequential: resident (C,1) outputs + shared scratch.
            dimension_semantics=("arbitrary", "arbitrary", "arbitrary"),
            vmem_limit_bytes=vmem_limit_bytes),
    )(x_stats, gamma.astype(jnp.float32), beta.astype(jnp.float32))

    scale = scale2d.reshape(c)                  # 1-D (C,) for cheap SMEM use
    bias = bias2d.reshape(c)

    # ---------- pass 2: fused pixel-shuffle + normalize + ReLU ---------------
    # Output viewed as (N, C, H, r*Wo): element [n, c, h, i*Wo + w*r + j] is
    # out[n, c, h*r+i, w*r+j] = x[n, c*r^2 + i*r + j, h, w].  Permutation
    # matrices implement the lane interleave: pmat[g, w, m] = 1 iff
    # m == (g // r) * (r*W) + w*r + (g % r).
    g_idx = jnp.arange(r2, dtype=jnp.int32)[:, None, None]
    w_idx = jnp.arange(w, dtype=jnp.int32)[None, :, None]
    m_idx = jnp.arange(r2 * w, dtype=jnp.int32)[None, None, :]
    target = (g_idx // r) * (r * w) + w_idx * r + (g_idx % r)
    pmat = (m_idx == target).astype(jnp.float32)        # (r^2, W, r^2*W)

    x_shuf = x.reshape(n, c, r2, h, w)          # free reshape of the raw input
    th = _pick_row_tile(h, r2 * w, itemsize, max_tile_bytes)
    grid2 = (c, n, h // th)

    out_view = pl.pallas_call(
        _shuffle_norm_relu_kernel,
        out_shape=jax.ShapeDtypeStruct((n, c, h, r2 * w), x.dtype),
        grid_spec=pltpu.PrefetchScalarGridSpec(
            num_scalar_prefetch=0,
            grid=grid2,
            in_specs=[pl.BlockSpec((None, None, r2, th, w),
                                   lambda ci, ni, ti: (ni, ci, 0, ti, 0)),
                      pl.BlockSpec((r2, w, r2 * w),
                                   lambda ci, ni, ti: (0, 0, 0)),
                      smem_spec, smem_spec],
            out_specs=pl.BlockSpec((None, None, th, r2 * w),
                                   lambda ci, ni, ti: (ni, ci, ti, 0))),
        compiler_params=pltpu.CompilerParams(
            dimension_semantics=("parallel", "parallel", "parallel"),
            vmem_limit_bytes=vmem_limit_bytes),
    )(x_shuf, pmat, scale, bias)

    # (N, C, H, r*Wo) -> (N, C, Ho, Wo): pure row-major regrouping, no copy.
    return out_view.reshape(n, c, ho, wo)


def reference(x, gamma, beta, ratio=2):
    xs = pixel_shuffle(x, ratio).astype(jnp.float32)
    mean = xs.mean(axis=(0, 2, 3), keepdims=True)
    var = xs.var(axis=(0, 2, 3), keepdims=True)  # biased (training-mode BN)
    g = gamma.reshape(1, -1, 1, 1)
    b = beta.reshape(1, -1, 1, 1)
    y = (xs - mean) / jnp.sqrt(var + EPS) * g + b
    return jnp.maximum(y, 0.0)


if __name__ == "__main__":
    key = jax.random.PRNGKey(0)
    kx, kg, kb = jax.random.split(key, 3)

    channels_out = 4
    ratio = 2
    N, H, W = 2, 16, 16
    C_in = channels_out * ratio * ratio          # 16

    x = jax.random.normal(kx, (N, C_in, H, W), dtype=jnp.float32)
    gamma = 1.0 + 0.1 * jax.random.normal(kg, (channels_out,), dtype=jnp.float32)
    beta = 0.1 * jax.random.normal(kb, (channels_out,), dtype=jnp.float32)

    ref = reference(x, gamma, beta, ratio=ratio)

    out = jax.block_until_ready(pixshuf_bn_relu(x, gamma, beta, ratio=ratio))
    assert out.shape == (N, channels_out, H * ratio, W * ratio)
    assert jnp.allclose(out, ref, rtol=1e-4, atol=5e-5), "mismatch vs reference"

    # exercise multi-tile paths (several blocks per channel in both passes)
    out2 = jax.block_until_ready(
        pixshuf_bn_relu(x, gamma, beta, ratio=ratio, max_tile_bytes=2 * 1024))
    assert jnp.allclose(out2, ref, rtol=1e-4, atol=5e-5), "mismatch (small tiles)"

    print("KERNEL_OK")
</pallas_src>

<mosaic_0001>
module attributes {stable_mosaic.version = 11 : i64} {
  func.func @_stats_kernel(%arg0: i32, %arg1: i32, %arg2: i32, %arg3: memref<1x1x8x128xf32, #tpu.memory_space<vmem>>, %arg4: memref<4xf32, #tpu.memory_space<smem>>, %arg5: memref<4xf32, #tpu.memory_space<smem>>, %arg6: memref<4x1xf32, #tpu.memory_space<vmem>>, %arg7: memref<4x1xf32, #tpu.memory_space<vmem>>, %arg8: memref<1x1xf32, #tpu.memory_space<vmem>>, %arg9: memref<8x128xf32, #tpu.memory_space<vmem>>, %arg10: memref<8x128xf32, #tpu.memory_space<vmem>>) attributes {dimension_semantics = [#tpu.dimension_semantics<arbitrary>, #tpu.dimension_semantics<arbitrary>, #tpu.dimension_semantics<arbitrary>], iteration_bounds = array<i64: 4, 2, 1>, scalar_prefetch = 0 : i64, scratch_operands = 3 : i64, tpu.core_type = #tpu.core_type<tc>, window_params = [{transform_indices = @transform_0, window_bounds = array<i64: 1, 1, 8, 128>}, {transform_indices = @transform_1, window_bounds = array<i64: 4>}, {transform_indices = @transform_2, window_bounds = array<i64: 4>}, {pipeline_mode = #tpu.pipeline_mode<synchronous>, transform_indices = @transform_3, window_bounds = array<i64: 4, 1>}, {pipeline_mode = #tpu.pipeline_mode<synchronous>, transform_indices = @transform_4, window_bounds = array<i64: 4, 1>}]} {
    %c0_i32 = arith.constant 0 : i32
    %0 = arith.cmpi eq, %arg1, %c0_i32 : i32
    %c0_i32_0 = arith.constant 0 : i32
    %1 = arith.cmpi eq, %arg2, %c0_i32_0 : i32
    %2 = arith.andi %0, %1 : i1
    %c1_i32 = arith.constant 1 : i32
    %3 = arith.cmpi eq, %arg1, %c1_i32 : i32
    %c0_i32_1 = arith.constant 0 : i32
    %4 = arith.cmpi eq, %arg2, %c0_i32_1 : i32
    %5 = arith.andi %3, %4 : i1
    %c0 = arith.constant 0 : index
    %c0_2 = arith.constant 0 : index
    %c0_3 = arith.constant 0 : index
    %c0_4 = arith.constant 0 : index
    %6 = vector.load %arg3[%c0, %c0_2, %c0_3, %c0_4] : memref<1x1x8x128xf32, #tpu.memory_space<vmem>>, vector<1x1x8x128xf32>
    %7 = vector.shape_cast %6 : vector<1x1x8x128xf32> to vector<8x128xf32>
    %8 = arith.extui %2 : i1 to i32
    %c0_i32_5 = arith.constant 0 : i32
    %9 = arith.cmpi ne, %8, %c0_i32_5 : i32
    scf.if %9 {
      %cst = arith.constant dense<0.000000e+00> : vector<8xf32>
      %22 = vector.multi_reduction <add>, %7, %cst [1] : vector<8x128xf32> to vector<8xf32>
      %23 = vector.shape_cast %22 : vector<8xf32> to vector<8x1xf32>
      %cst_17 = arith.constant dense<0.000000e+00> : vector<1xf32>
      %24 = vector.multi_reduction <add>, %23, %cst_17 [0] : vector<8x1xf32> to vector<1xf32>
      %25 = vector.shape_cast %24 : vector<1xf32> to vector<1x1xf32>
      %cst_18 = arith.constant 9.765625E-4 : f32
      %26 = vector.broadcast %cst_18 : f32 to vector<1x1xf32>
      %27 = arith.mulf %25, %26 : vector<1x1xf32>
      %c0_19 = arith.constant 0 : index
      %c0_20 = arith.constant 0 : index
      %28 = vector.load %arg8[%c0_19, %c0_20] : memref<1x1xf32, #tpu.memory_space<vmem>>, vector<1x1xf32>
      tpu.vector_store %arg8[%c0_19, %c0_20], %27 {strides = array<i32>} : memref<1x1xf32, #tpu.memory_space<vmem>>, vector<1x1xf32>,
      %cst_21 = arith.constant 0.000000e+00 : f32
      %29 = vector.broadcast %cst_21 : f32 to vector<8x128xf32>
      %c0_22 = arith.constant 0 : index
      %c0_23 = arith.constant 0 : index
      %30 = vector.load %arg9[%c0_22, %c0_23] : memref<8x128xf32, #tpu.memory_space<vmem>>, vector<8x128xf32>
      tpu.vector_store %arg9[%c0_22, %c0_23], %29 {strides = array<i32>} : memref<8x128xf32, #tpu.memory_space<vmem>>, vector<8x128xf32>,
      %cst_24 = arith.constant 0.000000e+00 : f32
      %31 = vector.broadcast %cst_24 : f32 to vector<8x128xf32>
      %c0_25 = arith.constant 0 : index
      %c0_26 = arith.constant 0 : index
      %32 = vector.load %arg10[%c0_25, %c0_26] : memref<8x128xf32, #tpu.memory_space<vmem>>, vector<8x128xf32>
      tpu.vector_store %arg10[%c0_25, %c0_26], %31 {strides = array<i32>} : memref<8x128xf32, #tpu.memory_space<vmem>>, vector<8x128xf32>,
    } else {
    }
    %c0_6 = arith.constant 0 : index
    %c0_7 = arith.constant 0 : index
    %10 = vector.load %arg8[%c0_6, %c0_7] : memref<1x1xf32, #tpu.memory_space<vmem>>, vector<1x1xf32>
    %11 = vector.broadcast %10 : vector<1x1xf32> to vector<8x128xf32>
    %12 = arith.subf %7, %11 : vector<8x128xf32>
    %c0_8 = arith.constant 0 : index
    %c0_9 = arith.constant 0 : index
    %13 = vector.load %arg9[%c0_8, %c0_9] : memref<8x128xf32, #tpu.memory_space<vmem>>, vector<8x128xf32>
    %14 = arith.addf %13, %12 : vector<8x128xf32>
    %c0_10 = arith.constant 0 : index
    %c0_11 = arith.constant 0 : index
    %15 = vector.load %arg9[%c0_10, %c0_11] : memref<8x128xf32, #tpu.memory_space<vmem>>, vector<8x128xf32>
    tpu.vector_store %arg9[%c0_10, %c0_11], %14 {strides = array<i32>} : memref<8x128xf32, #tpu.memory_space<vmem>>, vector<8x128xf32>,
    %c0_12 = arith.constant 0 : index
    %c0_13 = arith.constant 0 : index
    %16 = vector.load %arg10[%c0_12, %c0_13] : memref<8x128xf32, #tpu.memory_space<vmem>>, vector<8x128xf32>
    %17 = arith.mulf %12, %12 : vector<8x128xf32>
    %18 = arith.addf %16, %17 : vector<8x128xf32>
    %c0_14 = arith.constant 0 : index
    %c0_15 = arith.constant 0 : index
    %19 = vector.load %arg10[%c0_14, %c0_15] : memref<8x128xf32, #tpu.memory_space<vmem>>, vector<8x128xf32>
    tpu.vector_store %arg10[%c0_14, %c0_15], %18 {strides = array<i32>} : memref<8x128xf32, #tpu.memory_space<vmem>>, vector<8x128xf32>,
    %20 = arith.extui %5 : i1 to i32
    %c0_i32_16 = arith.constant 0 : i32
    %21 = arith.cmpi ne, %20, %c0_i32_16 : i32
    scf.if %21 {
      %c0_17 = arith.constant 0 : index
      %c0_18 = arith.constant 0 : index
      %22 = vector.load %arg9[%c0_17, %c0_18] : memref<8x128xf32, #tpu.memory_space<vmem>>, vector<8x128xf32>
      %cst = arith.constant dense<0.000000e+00> : vector<8xf32>
      %23 = vector.multi_reduction <add>, %22, %cst [1] : vector<8x128xf32> to vector<8xf32>
      %24 = vector.shape_cast %23 : vector<8xf32> to vector<8x1xf32>
      %cst_19 = arith.constant dense<0.000000e+00> : vector<1xf32>
      %25 = vector.multi_reduction <add>, %24, %cst_19 [0] : vector<8x1xf32> to vector<1xf32>
      %26 = vector.shape_cast %25 : vector<1xf32> to vector<1x1xf32>
      %c0_20 = arith.constant 0 : index
      %c0_21 = arith.constant 0 : index
      %27 = vector.load %arg10[%c0_20, %c0_21] : memref<8x128xf32, #tpu.memory_space<vmem>>, vector<8x128xf32>
      %cst_22 = arith.constant dense<0.000000e+00> : vector<8xf32>
      %28 = vector.multi_reduction <add>, %27, %cst_22 [1] : vector<8x128xf32> to vector<8xf32>
      %29 = vector.shape_cast %28 : vector<8xf32> to vector<8x1xf32>
      %cst_23 = arith.constant dense<0.000000e+00> : vector<1xf32>
      %30 = vector.multi_reduction <add>, %29, %cst_23 [0] : vector<8x1xf32> to vector<1xf32>
      %31 = vector.shape_cast %30 : vector<1xf32> to vector<1x1xf32>
      %cst_24 = arith.constant 4.8828125E-4 : f32
      %32 = vector.broadcast %cst_24 : f32 to vector<1x1xf32>
      %33 = arith.mulf %26, %32 : vector<1x1xf32>
      %c0_25 = arith.constant 0 : index
      %c0_26 = arith.constant 0 : index
      %34 = vector.load %arg8[%c0_25, %c0_26] : memref<1x1xf32, #tpu.memory_space<vmem>>, vector<1x1xf32>
      %35 = arith.addf %34, %33 : vector<1x1xf32>
      %cst_27 = arith.constant 4.8828125E-4 : f32
      %36 = vector.broadcast %cst_27 : f32 to vector<1x1xf32>
      %37 = arith.mulf %31, %36 : vector<1x1xf32>
      %38 = arith.mulf %33, %33 : vector<1x1xf32>
      %39 = arith.subf %37, %38 : vector<1x1xf32>
      %cst_28 = arith.constant 0.000000e+00 : f32
      %40 = vector.broadcast %cst_28 : f32 to vector<1x1xf32>
      %41 = arith.maximumf %39, %40 : vector<1x1xf32>
      %cst_29 = arith.constant 9.99999974E-6 : f32
      %42 = vector.broadcast %cst_29 : f32 to vector<1x1xf32>
      %43 = arith.addf %41, %42 : vector<1x1xf32>
      %44 = math.rsqrt %43 : vector<1x1xf32>
      %45 = arith.index_cast %arg0 : i32 to index
      %46 = memref.load %arg4[%45] : memref<4xf32, #tpu.memory_space<smem>>
      %47 = vector.broadcast %46 : f32 to vector<1x1xf32>
      %48 = arith.mulf %47, %44 : vector<1x1xf32>
      %49 = arith.index_cast %arg0 : i32 to index
      %50 = memref.load %arg5[%49] : memref<4xf32, #tpu.memory_space<smem>>
      %51 = arith.mulf %35, %48 : vector<1x1xf32>
      %52 = vector.broadcast %50 : f32 to vector<1x1xf32>
      %53 = arith.subf %52, %51 : vector<1x1xf32>
      %54 = arith.index_cast %arg0 : i32 to index
      %c0_30 = arith.constant 0 : index
      %55 = vector.load %arg6[%54, %c0_30] : memref<4x1xf32, #tpu.memory_space<vmem>>, vector<1x1xf32>
      tpu.vector_store %arg6[%54, %c0_30], %48 {strides = array<i32>} : memref<4x1xf32, #tpu.memory_space<vmem>>, vector<1x1xf32>,
      %56 = arith.index_cast %arg0 : i32 to index
      %c0_31 = arith.constant 0 : index
      %57 = vector.load %arg7[%56, %c0_31] : memref<4x1xf32, #tpu.memory_space<vmem>>, vector<1x1xf32>
      tpu.vector_store %arg7[%56, %c0_31], %53 {strides = array<i32>} : memref<4x1xf32, #tpu.memory_space<vmem>>, vector<1x1xf32>,
    } else {
    }
    return
  }
  func.func @transform_0(%arg0: i32, %arg1: i32, %arg2: i32) -> (i32, i32, i32, i32) {
    %c0_i32 = arith.constant 0 : i32
    %c0_i32_0 = arith.constant 0 : i32
    return %arg1, %arg0, %arg2, %c0_i32 : i32, i32, i32, i32
  }
  func.func @transform_1(%arg0: i32, %arg1: i32, %arg2: i32) -> i32 {
    %c0_i32 = arith.constant 0 : i32
    %c0_i32_0 = arith.constant 0 : i32
    return %c0_i32 : i32
  }
  func.func @transform_2(%arg0: i32, %arg1: i32, %arg2: i32) -> i32 {
    %c0_i32 = arith.constant 0 : i32
    %c0_i32_0 = arith.constant 0 : i32
    return %c0_i32 : i32
  }
  func.func @transform_3(%arg0: i32, %arg1: i32, %arg2: i32) -> (i32, i32) {
    %c0_i32 = arith.constant 0 : i32
    %c0_i32_0 = arith.constant 0 : i32
    %c0_i32_1 = arith.constant 0 : i32
    return %c0_i32, %c0_i32_0 : i32, i32
  }
  func.func @transform_4(%arg0: i32, %arg1: i32, %arg2: i32) -> (i32, i32) {
    %c0_i32 = arith.constant 0 : i32
    %c0_i32_0 = arith.constant 0 : i32
    %c0_i32_1 = arith.constant 0 : i32
    return %c0_i32, %c0_i32_0 : i32, i32
  }
}

</mosaic_0001>

<bundles_post_ra>
// kernel: tpu_custom_call.1
= control target key start
LH: loop header
LB: loop body
LE: loop exit
PB: predicated region body
PF: predicated region fallthrough
CT: control target
= control target key end

     0   :  { %s863_s0 = inlined_call_operand.hbm [shape: f32[2,4,8,128], index: 0, kind: input, shape index: {}]   ;;  %s864_s1 = inlined_call_operand.hbm [shape: f32[4], index: 1, kind: input, shape index: {}]   ;;  %s865_s2 = inlined_call_operand.vmem [shape: f32[4], index: 2, kind: input, shape index: {}]   ;;  %s866_s3 = inlined_call_operand.vmem [shape: f32[4,1], index: 3, kind: output, shape index: {0}]   ;;  %s867_s4 = inlined_call_operand.vmem [shape: f32[4,1], index: 4, kind: output, shape index: {1}]  }
   0x1   :  { %870 = sst [smem:[#allocation16_spill]] %s864_s1 }
   0x2   :  { %871 = sst [smem:[#allocation17_spill]] %s865_s2 }
   0x3   :  { %10 = vsyncpa [#allocation6], 0 }
   0x4   :  { %12 = vsyncpa [#allocation6 + $0x1], 0 }
   0x5   :  { %13 = vsyncpa [#allocation7], 0 }
   0x6   :  { %14 = vsyncpa [#allocation8], 0  ;;  %s711_s15 = smov 0   ;;  %s713_s16 = smov 0  }
   0x7   :  { %s715_s17 = smov 0   ;;  %s717_s18 = smov 0  }
   0x8   :  { %s719_s19 = smov 0   ;;  %s721_s20 = smov 0  }
   0x9   :  { %s723_s21 = smov 0   ;;  %s725_s22 = smov 0  }
   0xa LB: > { %872 = sst [smem:[#allocation14_spill]] %s672_s20  ;;  %s430_s23 = sadd.s32 4294967295, %s680_s22   ;;  %s680_s22 = sphi %s725_s22, %s20_s22   ;;  %s676_s21 = sphi %s723_s21, %s886_s21   ;;  %s672_s20 = sphi %s721_s20, %s881_s20   ;;  %s668_s19 = sphi %s719_s19, %s885_s19   ;;  %s664_s18 = sphi %s717_s18, %s880_s18   ;;  %s660_s17 = sphi %s715_s17, %s884_s17   ;;  %s656_s16 = sphi %s713_s16, %s883_s16   ;;  %s652_s15 = sphi %s711_s15, %s882_s15  }
   0xb   : > { %p63_p0 = scmp.ne.s32.totalorder %s656_s16, %s652_s15  ;;  %p751_p1 = scmp.eq.s32.totalorder %s430_s23, 0 }
   0xc   : > { %p431_p2 = scmp.ge.s32.totalorder %s680_s22, 1  ;;  %p158_p3 = scmp.lt.s32.totalorder %s680_s22, 9 }
   0xd   : > { %p759_p4 = por %p751_p1, %p63_p0  ;;  %s875_s1 = sld [smem:[#allocation16_spill]] }
   0xe   : > { %p766_p5 = pnand %p431_p2, %p158_p3  ;;  %s877_s2 = sld [smem:[#allocation17_spill]] }
   0xf   : > { %s682_s7 = smov [#allocation9]   ;;  %s683_s8 = smov [#allocation10]  }
  0x10   : > { %p458_p6 = pneg %p766_p5  ;;  %s35_s9 = sadd.s32 1, %s672_s20 }
  0x11   : > { %s39_s10 = sadd.s32 1, %s676_s21  ;;  %p37_p8 = scmp.ge.s32.totalorder %s35_s9, 2 }
  0x12   : > { %p459_p7 = pnand %p458_p6, %p751_p1  ;;  %s50_s11 = sadd.s32 1, %s660_s17 }
  0x13   : > { %s170_s28 = sshll.u32 %s875_s1, 4  ;;  %p57_p9 = scmp.ne.s32.totalorder %s660_s17, %s656_s16  ;;  %s171_s28 = int_to_ptr.hbm [resolvable:$true] %s170_s28 }
  0x14   : > { %s180_s6 = sshll.u32 %s877_s2, 4  ;;  %p58_p10 = scmp.eq.s32.totalorder %s680_s22, 0  ;;  %s181_s6 = int_to_ptr.vmem [resolvable:$true] %s180_s6 }
  0x15   : > { %461 = dma.hbm_to_smem (!%p459_p7), %s171_s28, 16, %s682_s7, [#allocation7]  }
  0x16   : > { %464 = dma.vmem_to_smem (!%p459_p7), %s181_s6, 16, %s683_s8, [#allocation8]  }
  0x17   : > { %s888_s9 = smov (%p37_p8, %s35_s9), 0  ;;  %s890_s10 = smov (!%p37_p8, %s39_s10), %s676_s21 }
  0x18   : > { %878 = sst [smem:[#allocation15_spill]] %s888_s9  ;;  %s43_s12 = ssub.s32 %s672_s20, %s888_s9 }
  0x19   : > { %p788_p11 = por %p58_p10, %p57_p9  ;;  %p41_p12 = scmp.ge.s32.totalorder %s890_s10, 4 }
  0x1a   : > { %p471_p13 = scmp.lt.s32.totalorder %s680_s22, 8  ;;  %s191_s14 = sand.u32 1, %s660_s17  }
  0x1b   : > { %s436_s15 = sshll.u32 %s672_s20, 2  ;;  %s892_s10 = smov (%p41_p12, %s890_s10), 0 }
  0x1c   : > { %s435_s23 = sshll.u32 %s191_s14, 3  ;;  %s44_s26 = ssub.s32 %s676_s21, %s892_s10 }
  0x1d   : > { %s45_s27 = sor.u32 %s44_s26, %s43_s12  ;;  %s200_s28 = sadd.s32 %s676_s21, %s436_s15 }
  0x1e   : > { %p48_p0 = scmp.eq.s32.totalorder %s45_s27, 0  ;;  %s437_s30 = sshll.u32 %s200_s28, 3 }
  0x1f   : > { %s202_s7 = scalar_lea.hbm %s863_s0, %s437_s30  ;;  %s195_s8 = scalar_lea.vmem [#allocation5], %s435_s23 }
  0x20   : > { %s206_s1 = sshll.u32 %s195_s8, 4  ;;  %s204_s9 = sshll.u32 %s202_s7, 4  ;;  %s207_s1 = int_to_ptr.vmem [resolvable:$true] %s206_s1  ;;  %s205_s9 = int_to_ptr.hbm [resolvable:$true] %s204_s9 }
  0x21   : > { %s804_s2 = scalar_select %p48_p0, %s660_s17, %s50_s11  }
  0x22   : > { %p466_p2 = pnand %p471_p13, %p788_p11  ;;  %s192_s20 = scalar_lea.sflag [#allocation6], %s191_s14 }
  0x23   : > { %215 = sbr.rel (%p766_p5) target bundleno = 482 (0x1e2), region = 32  ;;  %s217_s12 = sand.u32 (!%p766_p5), 1, %s656_s16  }
  0x24   : > { %468 = dma.hbm_to_vmem [thread:$0]  (!%p466_p2), %s205_s9, 128, %s207_s1, %s192_s20  }
  0x25   : > { %s439_s15 = sshll.u32 (!%p766_p5), %s217_s12, 3  ;;  %s218_s26 = scalar_lea.sflag (!%p766_p5), [#allocation6], %s217_s12 }
  0x26   : > { %s221_s23 = scalar_lea.vmem (!%p766_p5), [#allocation5], %s439_s15 }
  0x28   : > { %639 = dma.done.wait (%p759_p4), %s218_s26, 128  }
  0x29   : > { %641 = vsyncadd (%p759_p4), %s218_s26, 4294967168 }
  0x2a   : > { %643 = dma.done.wait (%p751_p1), [#allocation7], 16  }
  0x2b   : > { %645 = vsyncadd (%p751_p1), [#allocation7], 4294967280 }
  0x2c   : > { %647 = dma.done.wait (%p751_p1), [#allocation8], 16  }
  0x2d   : > { %649 = vsyncadd (%p751_p1), [#allocation8], 4294967280 }
  0x2e   : > { %237 = sfence }
  0x2f   : > { %p253_p3 = scmp.eq.s32.totalorder %s664_s18, 0  ;;  %p257_p5 = scmp.eq.s32.totalorder %s664_s18, 1  ;;  %v260_v0 = vld [vmem:[%s221_s23] sm:$0xff] }
  0x30   : > { %263 = vadd.xlane.f32.xlu0 (%p253_p3), %v260_v0  ;;  %v684_v1 = vmov (%p253_p3), 0.0   ;;  %vm272_vm0 = vcmask (%p253_p3), 0  }
  0x31   : > { %262 = sbr.rel (!%p253_p3) target bundleno = 179 (0xb3), region = 48  ;;  %274 = vst [vmem:[#allocation3] sm:$0xff] (%p253_p3), %v684_v1 }
  0x32   : > { %275 = vst [vmem:[#allocation4] sm:$0xff] (%p253_p3), %v684_v1 }
  0xa3   : > { %v264_v2 = vpop.xlane.xlu0 %263 }
  0xa4   : > { %v265_v3 = vrot.slane %v264_v2, 4 }
  0xa6   : > { %v266_v4 = vadd.f32 %v265_v3, %v264_v2 }
  0xa8   : > { %v267_v5 = vrot.slane %v266_v4, 2 }
  0xaa   : > { %v268_v6 = vadd.f32 %v267_v5, %v266_v4 }
  0xac   : > { %v269_v7 = vrot.slane %v268_v6, 1 }
  0xae   : > { %v270_v8 = vadd.f32 %v269_v7, %v268_v6 }
  0xb0   : > { %v271_v9 = vmul.f32 0.0009765625, %v270_v8 }
  0xb2   : > { %273 = vst.msk [vmem:[#allocation2] sm:$0x1] %vm272_vm0, %v271_v9 }
  0xb3 PF: > { %v685_v11 = vmov 0   ;;  %s329_s1 = sld [smem:[#allocation9 + %s668_s19]] (%p257_p5)  ;;  %s336_s25 = scalar_lea.vmem (%p257_p5), %s866_s3, %s668_s19  ;;  %vm337_vm4 = vcmask (%p257_p5), 0  }
  0xb4   : > { %542 = vset.pattern.permute.xlu0 %v685_v11  ;;  %s332_s18 = sld [smem:[#allocation10 + %s668_s19]] (%p257_p5)  ;;  %s339_s11 = scalar_lea.vmem (%p257_p5), %s867_s4, %s668_s19 }
  0xb5   : > { %v284_v12 = vld [vmem:[#allocation3] sm:$0xff] }
  0xb6   : > { %v287_v15 = vld [vmem:[#allocation4] sm:$0xff] }
  0xb9   : > { %v543_v10 = vld [vmem:[#allocation2] ss:$0 sm:$0xff]  ;;  %v330_v47 = vstv (%p257_p5), %s329_s1 }
  0xba   : > { %280 = vperm.xlu0 %542, %v543_v10   ;;  %v312_v46 = vld [vmem:[#allocation2] sm:$0x1] (%p257_p5)  ;;  %v334_v52 = vstv (%p257_p5), %s332_s18 }
 0x12c   : > { %v281_v13 = vpop.permute.xlu0 %280 }
 0x12d   : > { %v283_v14 = vsub.f32 %v260_v0, %v281_v13 }
 0x12f   : > { %v285_v16 = vadd.f32 %v284_v12, %v283_v14  ;;  %v288_v17 = vmul.f32 %v283_v14, %v283_v14  ;;  %292 = sbr.rel (!%p257_p5) target bundleno = 482 (0x1e2), region = 52 }
 0x131   : > { %286 = vst [vmem:[#allocation3] sm:$0xff] %v285_v16  ;;  %v289_v18 = vadd.f32 %v288_v17, %v287_v15 }
 0x133   : > { %290 = vst [vmem:[#allocation4] sm:$0xff] %v289_v18 }
 0x138   : > { %v293_v19 = vld [vmem:[#allocation3] sm:$0xff] }
 0x139   : > { %294 = vadd.xlane.f32.xlu0 %v293_v19 }
 0x13a   : > { %v302_v20 = vld [vmem:[#allocation4] sm:$0xff] }
 0x141   : > { %303 = vadd.xlane.f32.xlu0 %v302_v20 }
 0x1ac   : > { %v295_v21 = vpop.xlane.xlu0 %294 }
 0x1ad   : > { %v296_v22 = vrot.slane %v295_v21, 4 }
 0x1af   : > { %v297_v23 = vadd.f32 %v296_v22, %v295_v21 }
 0x1b1   : > { %v298_v24 = vrot.slane %v297_v23, 2 }
 0x1b3   : > { %v299_v25 = vadd.f32 %v298_v24, %v297_v23 }
 0x1b4   : > { %v304_v26 = vpop.xlane.xlu0 %303 }
 0x1b5   : > { %v300_v27 = vrot.slane %v299_v25, 1  ;;  %v305_v28 = vrot.slane %v304_v26, 4 }
 0x1b7   : > { %v306_v29 = vadd.f32 %v305_v28, %v304_v26  ;;  %v301_v30 = vadd.f32 %v300_v27, %v299_v25 }
 0x1b9   : > { %v307_v31 = vrot.slane %v306_v29, 2  ;;  %v311_v33 = vmul.f32 0.00048828125, %v301_v30 }
 0x1bb   : > { %v308_v32 = vadd.f32 %v307_v31, %v306_v29  ;;  %v315_v36 = vmul.f32 %v311_v33, %v311_v33  ;;  %v313_v50 = vadd.f32 %v312_v46, %v311_v33 }
 0x1bd   : > { %v309_v34 = vrot.slane %v308_v32, 1 }
 0x1bf   : > { %v310_v35 = vadd.f32 %v309_v34, %v308_v32 }
 0x1c1   : > { %v314_v37 = vmul.f32 0.00048828125, %v310_v35 }
 0x1c3   : > { %v316_v38 = vsub.f32 %v314_v37, %v315_v36 }
 0x1c5   : > { %v317_v39 = vmax.f32 %v316_v38, 0.0 }
 0x1c7   : > { %v318_v40 = vadd.f32 1e-05, %v317_v39 }
 0x1c9   : > { %544 = vrsqrt.f32 %v318_v40  ;;  %vm325_vm2 = vweird.f32 %v318_v40 }
 0x1cf   : > { %v545_v41 = vpop.eup %544 }
 0x1d0   : > { %v320_v42 = vmul.f32 %v545_v41, %v318_v40  ;;  %vm326_vm1 = vweird.f32 %v545_v41 }
 0x1d1   : > { %vm327_vm3 = vmor %vm325_vm2, %vm326_vm1 }
 0x1d2   : > { %v321_v43 = vmul.f32 %v545_v41, %v320_v42 }
 0x1d4   : > { %v322_v44 = vmul.f32 0.5, %v321_v43 }
 0x1d6   : > { %v323_v45 = vsub.f32 1.5, %v322_v44 }
 0x1d8   : > { %v324_v48 = vmul.f32 %v545_v41, %v323_v45 }
 0x1da   : > { %v328_v49 = vsel %vm327_vm3, %v545_v41, %v324_v48 }
 0x1db   : > { %v331_v51 = vmul.f32 %v330_v47, %v328_v49 }
 0x1dd   : > { %v333_v53 = vmul.f32 %v331_v51, %v313_v50  ;;  %338 = vst.msk [vmem:[%s336_s25] sm:$0x1] %vm337_vm4, %v331_v51 }
 0x1df   : > { %v335_v54 = vsub.f32 %v334_v52, %v333_v53 }
 0x1e1   : > { %340 = vst.msk [vmem:[%s339_s11] sm:$0x1] %vm337_vm4, %v335_v54 }
 0x1e2 PF: > { %s20_s22 = sadd.s32 1, %s680_s22   ;;  %s880_s18 = sld [smem:[#allocation14_spill]] }
 0x1e3   : > { %p17_p1 = scmp.ge.s32.totalorder %s20_s22, 10   ;;  %s881_s20 = sld [smem:[#allocation15_spill]] }
 0x1e4   : > { %s882_s15 = smov %s656_s16  ;;  %s883_s16 = smov %s660_s17 }
 0x1e5   : > { %s884_s17 = smov %s804_s2  ;;  %s885_s19 = smov %s676_s21 }
 0x1e6   : > { %s886_s21 = smov %s892_s10  ;;  %19 = sbr.rel (!%p17_p1) target bundleno = 10 (0xa), region = 96 }
 0x1eb   :  { %358 = vsyncpa [#allocation6], 1 }
 0x1ec   :  { %360 = vsyncpa [#allocation6 + $0x1], 1 }
 0x1ed   :  { %361 = vsyncpa [#allocation7], 1 }
 0x1ee   :  { %363 = vsyncpa [#allocation7 + $0x1], 1 }
 0x1ef   :  { %364 = vsyncpa [#allocation8], 1 }
 0x1f0   :  { %366 = vsyncpa [#allocation8 + $0x1], 1 }

</bundles_post_ra>
